<compile_context>
chip_gen: v5e
topology: v5e:2x2
jax: 0.10.0
libtpu: 0.0.40
codegen_flags: <defaults>
</compile_context>

<pallas_src>
import jax
import jax.numpy as jnp
from jax.experimental import pallas as pl
from jax.experimental.pallas import tpu as pltpu

LANES = 1024                   # lane-dense last dim (multiple of 128) -> unmasked full-width vst
MAX_TILE_ROWS = 1024           # 1024 x 1024 f32 = 4 MiB/tile; in+out double-buffered = 16 MiB
MIN_PALLAS_ELEMS = 512 * 1024  # below this, XLA's fused FMA is already at HBM roofline


def _round_down(x, m):
    return (x // m) * m


def _sublane_multiple(dtype):
    # Native sublane packing: f32 -> 8, bf16/f16 -> 16, int8/fp8 -> 32.
    itemsize = jnp.dtype(dtype).itemsize
    return max(8, 32 // max(itemsize, 1))


def linear_kernel(w_ref, b_ref, x_ref, o_ref):
    # w_ref / b_ref: (1, 1) f32 scalars in SMEM.  x_ref / o_ref: (tile_rows, LANES) VMEM tiles.
    x = x_ref[...]
    w = w_ref[0, 0].astype(x.dtype)   # bf16 stays bf16 (native VPU on v6e/v7x); f32 stays f32
    b = b_ref[0, 0].astype(x.dtype)
    o_ref[...] = (x * w + b).astype(o_ref.dtype)


def _scalar_fma(x, weight, bias):
    # Plain-JAX path (tiny inputs / ragged tail); same compute dtype as the kernel.
    w = weight.reshape(()).astype(x.dtype)
    b = bias.reshape(()).astype(x.dtype)
    return x * w + b


def linear_forward(x, weight, bias, *, force_pallas=False):
    """y = x @ weight.T + bias for nn.Linear(1, 1).  x: (..., 1) -> (..., 1)."""
    assert x.shape[-1] == 1, "Linearmodel expects in_features == 1"
    orig_shape = x.shape
    flat = x.reshape(-1)                      # free bitcast
    n = flat.shape[0]

    # Small inputs: XLA's fused scalar FMA already hits HBM roofline and fuses
    # with producers/consumers; a custom call would be pure launch overhead.
    if n < MIN_PALLAS_ELEMS and not force_pallas:
        return _scalar_fma(x, weight, bias)

    sub = _sublane_multiple(x.dtype)
    full_rows = n // LANES                    # complete lane-dense rows, no padding

    # Tile sizing: <= MAX_TILE_ROWS, multiple of the native sublane packing,
    # and small enough that the grid has >= 2 steps so both of v7x's
    # TensorCores get work (harmless on single-TC v5e/v6e).
    tile_rows = min(MAX_TILE_ROWS, max(sub, _round_down(full_rows // 2, sub)))
    main_rows = _round_down(full_rows, tile_rows)
    n_main = main_rows * LANES

    if main_rows == 0:
        # Not even one lane-dense tile (only reachable with force_pallas on tiny N).
        return _scalar_fma(x, weight, bias)

    # Aligned bulk through Pallas with NO padding: when N is aligned this
    # reshape is a free bitcast and there is zero extra HBM traffic.
    slab = flat[:n_main].reshape(main_rows, LANES)

    w2 = weight.reshape(1, 1).astype(jnp.float32)
    b2 = bias.reshape(1, 1).astype(jnp.float32)

    tile_bytes = tile_rows * LANES * jnp.dtype(x.dtype).itemsize
    # ~4 buffers (in + out, double-buffered) + headroom; fits v7x's 64 MiB VMEM
    # (scoped default 32 MiB) and is far under v5e/v6e's 128 MiB.
    vmem_limit = int(4 * tile_bytes + 8 * 1024 * 1024)

    out = pl.pallas_call(
        linear_kernel,
        out_shape=jax.ShapeDtypeStruct((main_rows, LANES), x.dtype),
        grid=(main_rows // tile_rows,),
        in_specs=[
            pl.BlockSpec(memory_space=pltpu.MemorySpace.SMEM),   # weight scalar
            pl.BlockSpec(memory_space=pltpu.MemorySpace.SMEM),   # bias scalar
            pl.BlockSpec((tile_rows, LANES), lambda i: (i, 0)),  # x row-tiles
        ],
        out_specs=pl.BlockSpec((tile_rows, LANES), lambda i: (i, 0)),
        compiler_params=pltpu.CompilerParams(
            dimension_semantics=("parallel",),   # shard row tiles across v7x's 2 TCs
            vmem_limit_bytes=vmem_limit,
        ),
    )(w2, b2, slab)

    if n_main == n:
        return out.reshape(orig_shape)        # free bitcast, no extra HBM passes

    # Ragged tail (< tile_rows*LANES + LANES elements): fused XLA FMA, stitched
    # back on.  Only unaligned N pays this single concat pass.
    tail_y = _scalar_fma(flat[n_main:], weight, bias)
    return jnp.concatenate([out.reshape(-1), tail_y]).reshape(orig_shape)


if __name__ == "__main__":
    key = jax.random.PRNGKey(0)
    kx1, kx2, kx3, kw, kb = jax.random.split(key, 5)

    # Deterministic parameters (PyTorch default for in_features=1: U(-1, 1)).
    weight = jax.random.uniform(kw, (1, 1), jnp.float32, minval=-1.0, maxval=1.0)
    bias = jax.random.uniform(kb, (1,), jnp.float32, minval=-1.0, maxval=1.0)

    # 1) Small batch consistent with Linear(1, 1): plain-JAX fast path.
    x_small = jax.random.normal(kx1, (64, 1), jnp.float32)
    y_small = jax.block_until_ready(linear_forward(x_small, weight, bias))
    assert y_small.shape == (64, 1)
    assert jnp.allclose(y_small, x_small @ weight.T + bias, atol=1e-6), "fast path mismatch"

    # 2) Pallas path, aligned N (no tail, no concat), 2-step grid.
    x_aligned = jax.random.normal(kx2, (16 * LANES, 1), jnp.float32)
    y_aligned = jax.block_until_ready(
        linear_forward(x_aligned, weight, bias, force_pallas=True))
    assert y_aligned.shape == x_aligned.shape
    assert jnp.allclose(y_aligned, x_aligned @ weight.T + bias, atol=1e-6), "aligned mismatch"

    # 3) Pallas path, ragged N (aligned bulk in-kernel + JAX tail + concat).
    x_ragged = jax.random.normal(kx3, (8 * LANES + 300, 1), jnp.float32)
    y_ragged = jax.block_until_ready(
        linear_forward(x_ragged, weight, bias, force_pallas=True))
    assert y_ragged.shape == x_ragged.shape
    assert jnp.allclose(y_ragged, x_ragged @ weight.T + bias, atol=1e-6), "ragged mismatch"

    print("KERNEL_OK")
</pallas_src>

<mosaic_0001>
module attributes {stable_mosaic.version = 11 : i64} {
  func.func @linear_kernel(%arg0: i32, %arg1: memref<1x1xf32, #tpu.memory_space<smem>>, %arg2: memref<1x1xf32, #tpu.memory_space<smem>>, %arg3: memref<8x1024xf32, #tpu.memory_space<vmem>>, %arg4: memref<8x1024xf32, #tpu.memory_space<vmem>>) attributes {dimension_semantics = [#tpu.dimension_semantics<parallel>], iteration_bounds = array<i64: 2>, scalar_prefetch = 0 : i64, scratch_operands = 0 : i64, tpu.core_type = #tpu.core_type<tc>, window_params = [{transform_indices = @transform_0, window_bounds = array<i64: 1, 1>}, {transform_indices = @transform_1, window_bounds = array<i64: 1, 1>}, {transform_indices = @transform_2, window_bounds = array<i64: 8, 1024>}, {transform_indices = @transform_3, window_bounds = array<i64: 8, 1024>}]} {
    %c0 = arith.constant 0 : index
    %c0_0 = arith.constant 0 : index
    %0 = vector.load %arg3[%c0, %c0_0] : memref<8x1024xf32, #tpu.memory_space<vmem>>, vector<8x1024xf32>
    %c0_1 = arith.constant 0 : index
    %c0_2 = arith.constant 0 : index
    %1 = memref.load %arg1[%c0_1, %c0_2] : memref<1x1xf32, #tpu.memory_space<smem>>
    %c0_3 = arith.constant 0 : index
    %c0_4 = arith.constant 0 : index
    %2 = memref.load %arg2[%c0_3, %c0_4] : memref<1x1xf32, #tpu.memory_space<smem>>
    %3 = vector.broadcast %1 : f32 to vector<8x1024xf32>
    %4 = arith.mulf %0, %3 : vector<8x1024xf32>
    %5 = vector.broadcast %2 : f32 to vector<8x1024xf32>
    %6 = arith.addf %4, %5 : vector<8x1024xf32>
    %c0_5 = arith.constant 0 : index
    %c0_6 = arith.constant 0 : index
    %7 = vector.load %arg4[%c0_5, %c0_6] : memref<8x1024xf32, #tpu.memory_space<vmem>>, vector<8x1024xf32>
    tpu.vector_store %arg4[%c0_5, %c0_6], %6 {strides = array<i32>} : memref<8x1024xf32, #tpu.memory_space<vmem>>, vector<8x1024xf32>,
    return
  }
  func.func @transform_0(%arg0: i32) -> (i32, i32) {
    %c0_i32 = arith.constant 0 : i32
    %c0_i32_0 = arith.constant 0 : i32
    %c0_i32_1 = arith.constant 0 : i32
    return %c0_i32, %c0_i32_0 : i32, i32
  }
  func.func @transform_1(%arg0: i32) -> (i32, i32) {
    %c0_i32 = arith.constant 0 : i32
    %c0_i32_0 = arith.constant 0 : i32
    %c0_i32_1 = arith.constant 0 : i32
    return %c0_i32, %c0_i32_0 : i32, i32
  }
  func.func @transform_2(%arg0: i32) -> (i32, i32) {
    %c0_i32 = arith.constant 0 : i32
    %c0_i32_0 = arith.constant 0 : i32
    return %arg0, %c0_i32 : i32, i32
  }
  func.func @transform_3(%arg0: i32) -> (i32, i32) {
    %c0_i32 = arith.constant 0 : i32
    %c0_i32_0 = arith.constant 0 : i32
    return %arg0, %c0_i32 : i32, i32
  }
}

</mosaic_0001>

<bundles_post_ra>
// kernel: tpu_custom_call.1
= control target key start
LH: loop header
LB: loop body
LE: loop exit
PB: predicated region body
PF: predicated region fallthrough
CT: control target
= control target key end

     0   :  { %s631_s0 = inlined_call_operand.<no memory space> [shape: f32[1,1], index: 0, kind: input, shape index: {}]   ;;  %s632_s1 = inlined_call_operand.<no memory space> [shape: f32[1,1], index: 1, kind: input, shape index: {}]   ;;  %s633_s2 = inlined_call_operand.hbm [shape: f32[16,1024], index: 2, kind: input, shape index: {}]   ;;  %s634_s3 = inlined_call_operand.hbm [shape: f32[16,1024], index: 3, kind: output, shape index: {}]  }
   0x1   :  { %8 = sst [smem:[#allocation2]] %s631_s0 }
   0x2   :  { %9 = sst [smem:[#allocation3]] %s632_s1 }
   0x3   :  { %10 = vsyncpa [#allocation5], 0 }
   0x4   :  { %12 = vsyncpa [#allocation5 + $0x1], 0 }
   0x5   :  { %13 = vsyncpa [#allocation6], 0 }
   0x6   :  { %15 = vsyncpa [#allocation6 + $0x1], 0  ;;  %s500_s16 = smov 0   ;;  %s502_s17 = smov 0  }
   0x7   :  { %s504_s18 = smov 0   ;;  %s506_s19 = smov 0  }
   0x8 LB: > { %s521_s0 = sadd.s32 4294967295, %s472_s19   ;;  %s314_s1 = sadd.s32 4294967294, %s472_s19   ;;  %s472_s19 = sphi %s506_s19, %s644_s19   ;;  %s468_s18 = sphi %s504_s18, %s643_s18   ;;  %s464_s17 = sphi %s502_s17, %s642_s17   ;;  %s460_s16 = sphi %s500_s16, %s641_s16  }
   0x9   : > { %s525_s20 = sadd.s32 1, %s472_s19   ;;  %s70_s21 = sadd.s32 1, %s468_s18 }
   0xa   : > { %s67_s22 = ssub.s32 %s472_s19, %s525_s20  ;;  %p77_p0 = scmp.ne.s32.totalorder %s468_s18, %s464_s17 }
   0xb   : > { %p68_p1 = scmp.eq.s32.totalorder %s67_s22, 0  ;;  %p78_p2 = scmp.eq.s32.totalorder %s472_s19, 0 }
   0xc   : > { %p83_p3 = scmp.ne.s32.totalorder %s464_s17, %s460_s16  ;;  %p84_p4 = scmp.eq.s32.totalorder %s521_s0, 0 }
   0xd   : > { %s537_s23 = scalar_select %p68_p1, %s468_s18, %s70_s21  }
   0xe   : > { %p539_p5 = por %p78_p2, %p77_p0  ;;  %p543_p6 = por %p84_p4, %p83_p3 }
   0xf   : > { %p107_p7 = scmp.eq.s32.totalorder %s521_s0, 1  ;;  %p113_p8 = scmp.eq.s32.totalorder %s314_s1, 1 }
  0x10   : > { %p342_p10 = scmp.lt.s32.totalorder %s472_s19, 2  ;;  %s139_s28 = sand.u32 1, %s468_s18  }
  0x11   : > { %p550_p11 = por %p107_p7, %p77_p0  ;;  %p554_p12 = por %p113_p8, %p83_p3 }
  0x12   : > { %s328_s29 = sshll.u32 %s472_s19, 6  ;;  %s317_s30 = sshll.u32 %s139_s28, 6 }
  0x13   : > { %s148_s6 = scalar_lea.hbm %s633_s2, %s328_s29  ;;  %s143_s8 = scalar_lea.vmem [#allocation4], %s317_s30 }
  0x14   : > { %s150_s7 = sshll.u32 %s148_s6, 4  ;;  %s152_s9 = sshll.u32 %s143_s8, 4  ;;  %s151_s7 = int_to_ptr.hbm [resolvable:$true] %s150_s7  ;;  %s153_s9 = int_to_ptr.vmem [resolvable:$true] %s152_s9 }
  0x15   : > { %p565_p13 = pnand %p342_p10, %p539_p5  ;;  %p320_p0 = scmp.ge.s32.totalorder %s472_s19, 1 }
  0x16   : > { %p157_p1 = scmp.lt.s32.totalorder %s472_s19, 3  ;;  %s140_s11 = scalar_lea.sflag [#allocation5], %s139_s28 }
  0x17   : > { %s376_s12 = sshra.s32 %s151_s7, 4  ;;  %p380_p3 = pneg %p565_p13  ;;  %s377_s12 = int_to_ptr.hbm [resolvable:$true] %s376_s12 }
  0x18   : > { %s378_s13 = scalar_lea.hbm %s377_s12, 64  ;;  %s383_s1 = scalar_lea.hbm %s633_s2, 128 }
  0x19   : > { %p379_p2 = scmp.ne.s32.totalorder %s377_s12, %s378_s13  ;;  %p384_p5 = scmp.lt.s32.totalorder %s377_s12, %s633_s2 }
  0x1a   : > { %p385_p8 = scmp.lt.s32.totalorder %s383_s1, %s378_s13 }
  0x1b   : > { %p381_p4 = pnand %p380_p3, %p379_p2 }
  0x1c   : > { %p386_p10 = por %p385_p8, %p384_p5 }
  0x1d   : > { %p382_p7 = pneg %p381_p4 }
  0x1f   : > { %p387_p9 = pnand %p386_p10, %p382_p7 }
  0x21   : > { %390 = shalt.err (!%p387_p9)
}
  0x22   : > { %337 = dma.hbm_to_vmem [thread:$0]  (!%p565_p13), %s151_s7, 1024, %s153_s9, %s140_s11  }
  0x23   : > { %p158_p2 = pnand %p320_p0, %p157_p1 }
  0x24   : > { %s586_s24 = sand.u32 (!%p158_p2), 1, %s464_s17  }
  0x25   : > { %161 = sbr.rel (%p158_p2) target bundleno = 64 (0x40), region = 32  ;;  %s321_s28 = sshll.u32 (!%p158_p2), %s586_s24, 6 }
  0x26   : > { %s164_s29 = scalar_lea.sflag (!%p158_p2), [#allocation5], %s586_s24  ;;  %s167_s30 = scalar_lea.vmem (!%p158_p2), [#allocation4], %s321_s28 }
  0x2a   : > { %451 = dma.done.wait (%p543_p6), %s164_s29, 1024  }
  0x2b   : > { %453 = vsyncadd (%p543_p6), %s164_s29, 4294966272  ;;  %s199_s4 = sld [smem:[#allocation2]]  ;;  %v191_v0 = vld [vmem:[%s167_s30] sm:$0xff]  ;;  %v192_v2 = vld [vmem:[%s167_s30 + $0x8] sm:$0xff]  ;;  %s329_s6 = sshll.u32 %s521_s0, 6 }
  0x2c   : > { %s200_s5 = sld [smem:[#allocation3]]  ;;  %v193_v3 = vld [vmem:[%s167_s30 + $0x10] sm:$0xff]  ;;  %v194_v8 = vld [vmem:[%s167_s30 + $0x18] sm:$0xff]  ;;  %v195_v9 = vld [vmem:[%s167_s30 + $0x20] sm:$0xff]  ;;  %s239_s8 = scalar_lea.hbm %s634_s3, %s329_s6 }
  0x2d   : > { %v196_v10 = vld [vmem:[%s167_s30 + $0x28] sm:$0xff]  ;;  %v197_v14 = vld [vmem:[%s167_s30 + $0x30] sm:$0xff]  ;;  %v198_v15 = vld [vmem:[%s167_s30 + $0x38] sm:$0xff]  ;;  %s190_s9 = scalar_lea.vmem [#allocation7], %s321_s28  ;;  %s243_s10 = sshll.u32 %s239_s8, 4  ;;  %s244_s10 = int_to_ptr.hbm [resolvable:$true] %s243_s10 }
  0x2e   : > { %s241_s0 = sshll.u32 %s190_s9, 4  ;;  %s228_s11 = scalar_lea.sflag [#allocation6], %s586_s24  ;;  %s242_s0 = int_to_ptr.vmem [resolvable:$true] %s241_s0 }
  0x2f   : > { %s420_s12 = sshra.s32 %s244_s10, 4  ;;  %s426_s1 = scalar_lea.hbm %s634_s3, 128  ;;  %s421_s12 = int_to_ptr.hbm [resolvable:$true] %s420_s12 }
  0x30   : > { %s422_s13 = scalar_lea.hbm %s421_s12, 64  ;;  %p427_p0 = scmp.lt.s32.totalorder %s421_s12, %s634_s3 }
  0x31   : > { %v201_v1 = vstv %s199_s4  ;;  %p423_p6 = scmp.ne.s32.totalorder %s421_s12, %s422_s13  ;;  %p428_p1 = scmp.lt.s32.totalorder %s426_s1, %s422_s13 }
  0x32   : > { %v202_v4 = vmul.f32 %v201_v1, %v191_v0  ;;  %v210_v5 = vstv %s200_s5  ;;  %v203_v6 = vmul.f32 %v201_v1, %v192_v2  ;;  %v204_v7 = vmul.f32 %v201_v1, %v193_v3 }
  0x33   : > { %v205_v11 = vmul.f32 %v201_v1, %v194_v8  ;;  %v206_v12 = vmul.f32 %v201_v1, %v195_v9  ;;  %v207_v13 = vmul.f32 %v201_v1, %v196_v10  ;;  %v208_v19 = vmul.f32 %v201_v1, %v197_v14  ;;  %p424_p9 = pnand %p423_p6, %p550_p11  ;;  %p429_p3 = por %p428_p1, %p427_p0 }
  0x34   : > { %v211_v16 = vadd.f32 %v210_v5, %v202_v4  ;;  %v212_v17 = vadd.f32 %v210_v5, %v203_v6  ;;  %v213_v18 = vadd.f32 %v210_v5, %v204_v7  ;;  %v209_v21 = vmul.f32 %v201_v1, %v198_v15 }
  0x35   : > { %v214_v20 = vadd.f32 %v210_v5, %v205_v11  ;;  %v215_v22 = vadd.f32 %v210_v5, %v206_v12  ;;  %v216_v23 = vadd.f32 %v210_v5, %v207_v13  ;;  %v217_v24 = vadd.f32 %v210_v5, %v208_v19  ;;  %p425_p13 = pneg %p424_p9 }
  0x36   : > { %219 = vst [vmem:[%s190_s9] sm:$0xff] %v211_v16  ;;  %v218_v25 = vadd.f32 %v210_v5, %v209_v21 }
  0x37   : > { %220 = vst [vmem:[%s190_s9 + $0x8] sm:$0xff] %v212_v17  ;;  %p430_p4 = pnand %p429_p3, %p425_p13 }
  0x38   : > { %221 = vst [vmem:[%s190_s9 + $0x10] sm:$0xff] %v213_v18 }
  0x39   : > { %222 = vst [vmem:[%s190_s9 + $0x18] sm:$0xff] %v214_v20 }
  0x3a   : > { %223 = vst [vmem:[%s190_s9 + $0x20] sm:$0xff] %v215_v22 }
  0x3b   : > { %224 = vst [vmem:[%s190_s9 + $0x28] sm:$0xff] %v216_v23 }
  0x3c   : > { %225 = vst [vmem:[%s190_s9 + $0x30] sm:$0xff] %v217_v24 }
  0x3d   : > { %226 = vst [vmem:[%s190_s9 + $0x38] sm:$0xff] %v218_v25 }
  0x3e   : > { %433 = shalt.err (!%p430_p4)
}
  0x3f   : > { %332 = dma.vmem_to_hbm [thread:$0]  (%p550_p11), %s242_s0, 1024, %s244_s10, %s228_s11  }
  0x40 PF: > { %s255_s24 = sand.u32 1, %s460_s16   ;;  %p640_p7 = scmp.ge.s32.totalorder %s472_s19, 2 }
  0x41   : > { %s256_s28 = scalar_lea.sflag [#allocation6], %s255_s24 }
  0x42   : > { %p339_p5 = pnand %p640_p7, %p554_p12 }
  0x44   : > { %p340_p8 = pneg %p339_p5 }
  0x46   : > { %455 = dma.done.wait (%p340_p8), %s256_s28, 1024  }
  0x47   : > { %457 = vsyncadd (%p340_p8), %s256_s28, 4294966272  ;;  %p18_p10 = scmp.ge.s32.totalorder %s525_s20, 4   ;;  %s641_s16 = smov %s464_s17 }
  0x48   : > { %s642_s17 = smov %s468_s18  ;;  %s643_s18 = smov %s537_s23 }
  0x49   : > { %s644_s19 = smov %s525_s20  ;;  %20 = sbr.rel (!%p18_p10) target bundleno = 8 (0x8), region = 77 }
  0x4e   :  { %262 = vsyncpa [#allocation5], 1 }
  0x4f   :  { %264 = vsyncpa [#allocation5 + $0x1], 1 }
  0x50   :  { %265 = vsyncpa [#allocation6], 1 }
  0x51   :  { %267 = vsyncpa [#allocation6 + $0x1], 1 }

</bundles_post_ra>
